<compile_context>
chip_gen: v6e
topology: v6e:2x2x1
jax: 0.10.0
libtpu: 0.0.40
codegen_flags: <defaults>
</compile_context>

<pallas_src>
import numpy as np
import jax
import jax.numpy as jnp
from jax.experimental import pallas as pl
from jax.experimental.pallas import tpu as pltpu


# ---------------------------------------------------------------------------
# Small helpers
# ---------------------------------------------------------------------------
def _round_up(x, m):
    return ((x + m - 1) // m) * m


def _pick_tile(n, candidates):
    for c in candidates:
        if n % c == 0:
            return c
    return n


_VMEM_LIMIT = 32 * 1024 * 1024  # well above actual tile footprints, < v7x 64MiB


# ---------------------------------------------------------------------------
# Pallas kernels
# ---------------------------------------------------------------------------
def _xw_kernel(x_ref, w_ref, xw_ref):
    # XW = X @ W_rel, bf16 operands -> f32 accumulate -> bf16 out (MXU operand
    # for the A @ XW pass).  Hoisted out of the k reduction (computed once).
    xw_ref[...] = jnp.dot(
        x_ref[...], w_ref[...], preferred_element_type=jnp.float32
    ).astype(xw_ref.dtype)


def _agg_relu_kernel(kidx_ref, kcnt_ref, a_ref, xw_ref, x_ref, wroot_ref, b_ref,
                     deg_ref, o_ref, acc_ref):
    # acc(i) = sum over nonzero k-tiles of A(i,k) @ XW(k)
    # out(i) = relu(acc(i) / deg(i) + x(i) @ W_root + b)   (bf16 handoff)
    i = pl.program_id(0)
    k = pl.program_id(1)

    @pl.when(k == 0)
    def _():
        acc_ref[...] = jnp.zeros_like(acc_ref)

    @pl.when(k < kcnt_ref[i])
    def _():
        acc_ref[...] += jnp.dot(
            a_ref[...], xw_ref[...], preferred_element_type=jnp.float32
        )

    @pl.when(k == pl.num_programs(1) - 1)
    def _():
        rootb = jnp.dot(
            x_ref[...], wroot_ref[...], preferred_element_type=jnp.float32
        ) + b_ref[...]
        inv_deg = 1.0 / jnp.maximum(deg_ref[...], 1.0)   # f32, exact
        o_ref[...] = jnp.maximum(acc_ref[...] * inv_deg + rootb, 0.0).astype(
            o_ref.dtype
        )


def _make_linear_logsoftmax_kernel(num_valid_cols):
    def kernel(x_ref, w_ref, b_ref, o_ref):
        y = jnp.dot(x_ref[...], w_ref[...], preferred_element_type=jnp.float32)
        y = y + b_ref[...]
        # Mask padded class columns so the softmax normalization is correct.
        col = jax.lax.broadcasted_iota(jnp.int32, y.shape, 1)
        y = jnp.where(col < num_valid_cols, y, -1e30)
        m = jnp.max(y, axis=1, keepdims=True)
        z = y - m
        lse = jnp.log(jnp.sum(jnp.exp(z), axis=1, keepdims=True))
        o_ref[...] = z - lse
    return kernel


# ---------------------------------------------------------------------------
# pallas_call wrappers
# ---------------------------------------------------------------------------
def precompute_xw(x_bf16, w_rel_bf16, tm):
    n_pad, f_in = x_bf16.shape
    f_out = w_rel_bf16.shape[1]
    # TODO(synk): for very large f_in/f_out (>=1024) the weight block should be
    # tiled along f_out (extra grid axis) to stay inside v7x's 64 MiB VMEM.
    return pl.pallas_call(
        _xw_kernel,
        out_shape=jax.ShapeDtypeStruct((n_pad, f_out), jnp.bfloat16),
        grid_spec=pltpu.PrefetchScalarGridSpec(
            num_scalar_prefetch=0,
            grid=(n_pad // tm,),
            in_specs=[
                pl.BlockSpec((tm, f_in), lambda i: (i, 0)),
                pl.BlockSpec((f_in, f_out), lambda i: (0, 0)),
            ],
            out_specs=pl.BlockSpec((tm, f_out), lambda i: (i, 0)),
        ),
        compiler_params=pltpu.CompilerParams(
            dimension_semantics=("parallel",),
            vmem_limit_bytes=_VMEM_LIMIT,
        ),
    )(x_bf16, w_rel_bf16)


def rgcn_aggregate_relu(a_bf16, xw_bf16, x_bf16, w_root_bf16, bias_row, deg,
                        kidx, kcnt, kmax, tm, tk):
    n_pad = a_bf16.shape[0]
    f_in = x_bf16.shape[1]
    f_out = xw_bf16.shape[1]
    nrt = n_pad // tm

    return pl.pallas_call(
        _agg_relu_kernel,
        out_shape=jax.ShapeDtypeStruct((n_pad, f_out), jnp.bfloat16),
        grid_spec=pltpu.PrefetchScalarGridSpec(
            num_scalar_prefetch=2,          # kidx (flat), kcnt
            grid=(nrt, kmax),
            in_specs=[
                # A tile: data-dependent k index -> only nonzero tiles visited;
                # repeated index for the tail means no new DMA.
                pl.BlockSpec((tm, tk),
                             lambda i, k, kidx, kcnt: (i, kidx[i * kmax + k])),
                pl.BlockSpec((tk, f_out),
                             lambda i, k, kidx, kcnt: (kidx[i * kmax + k], 0)),
                # Root-term operands: constant over k -> DMA'd once per row tile.
                pl.BlockSpec((tm, f_in), lambda i, k, kidx, kcnt: (i, 0)),
                pl.BlockSpec((f_in, f_out), lambda i, k, kidx, kcnt: (0, 0)),
                pl.BlockSpec((1, f_out), lambda i, k, kidx, kcnt: (0, 0)),
                pl.BlockSpec((tm, 1), lambda i, k, kidx, kcnt: (i, 0)),
            ],
            out_specs=pl.BlockSpec((tm, f_out), lambda i, k, kidx, kcnt: (i, 0)),
            scratch_shapes=[pltpu.VMEM((tm, f_out), jnp.float32)],
        ),
        compiler_params=pltpu.CompilerParams(
            dimension_semantics=("parallel", "arbitrary"),
            vmem_limit_bytes=_VMEM_LIMIT,
        ),
    )(kidx, kcnt, a_bf16, xw_bf16, x_bf16, w_root_bf16, bias_row, deg)


def linear_log_softmax(h_bf16, w_t_bf16, b_row, num_valid_cols, tm):
    n_pad, f_in = h_bf16.shape
    c_pad = w_t_bf16.shape[1]
    return pl.pallas_call(
        _make_linear_logsoftmax_kernel(num_valid_cols),
        out_shape=jax.ShapeDtypeStruct((n_pad, c_pad), jnp.float32),
        grid_spec=pltpu.PrefetchScalarGridSpec(
            num_scalar_prefetch=0,
            grid=(n_pad // tm,),
            in_specs=[
                pl.BlockSpec((tm, f_in), lambda i: (i, 0)),
                pl.BlockSpec((f_in, c_pad), lambda i: (0, 0)),
                pl.BlockSpec((1, c_pad), lambda i: (0, 0)),
            ],
            out_specs=pl.BlockSpec((tm, c_pad), lambda i: (i, 0)),
        ),
        compiler_params=pltpu.CompilerParams(
            dimension_semantics=("parallel",),
            vmem_limit_bytes=_VMEM_LIMIT,
        ),
    )(h_bf16, w_t_bf16, b_row)


# ---------------------------------------------------------------------------
# Per-relation graph preprocessing (host side, done once per relation)
# ---------------------------------------------------------------------------
def build_relation_blocks(edge_index, edge_type, rel, n_pad, tm, tk):
    """Returns (counts_bf16 [n_pad,n_pad], deg_f32 [n_pad,1],
    kidx_flat int32 [nrt*kmax], kcnt int32 [nrt], kmax)."""
    ei = np.asarray(edge_index)
    et = np.asarray(edge_type)
    m = et == rel
    s, t = ei[0][m], ei[1][m]

    counts = np.zeros((n_pad, n_pad), np.float32)
    np.add.at(counts, (s, t), 1.0)                    # exact small ints -> bf16 safe
    deg = counts.sum(axis=1, keepdims=True).astype(np.float32)

    nrt, nkt = n_pad // tm, n_pad // tk
    blk_nz = counts.reshape(nrt, tm, nkt, tk).sum(axis=(1, 3)) > 0
    kcnt = blk_nz.sum(axis=1).astype(np.int32)
    kmax = max(int(kcnt.max()) if kcnt.size else 0, 1)
    kidx = np.zeros((nrt, kmax), np.int32)
    for i in range(nrt):
        nz = np.nonzero(blk_nz[i])[0]
        if nz.size:
            kidx[i, : nz.size] = nz
            kidx[i, nz.size:] = nz[-1]                # repeat last -> no re-DMA
    return (
        jnp.asarray(counts, jnp.bfloat16),
        jnp.asarray(deg, jnp.float32),
        jnp.asarray(kidx.reshape(-1), jnp.int32),
        jnp.asarray(kcnt, jnp.int32),
        kmax,
    )


# ---------------------------------------------------------------------------
# Parameters
# ---------------------------------------------------------------------------
def init_params(key, input_dim, hidden_dim, num_rel, output_dim, ll_output_dim):
    ks = jax.random.split(key, 8)

    def u(k, shape, fan_in):
        bound = 1.0 / jnp.sqrt(fan_in)
        return jax.random.uniform(k, shape, jnp.float32, -bound, bound)

    return {
        "conv1": {
            "weight": u(ks[0], (num_rel, input_dim, hidden_dim), input_dim),
            "root": u(ks[1], (input_dim, hidden_dim), input_dim),
            "bias": jnp.zeros((hidden_dim,), jnp.float32),
        },
        "conv2": {
            "weight": u(ks[2], (num_rel, hidden_dim, output_dim), hidden_dim),
            "root": u(ks[3], (hidden_dim, output_dim), hidden_dim),
            "bias": jnp.zeros((output_dim,), jnp.float32),
        },
        # torch Linear: weight [out, in], bias [out]
        "linear_w": u(ks[4], (ll_output_dim, output_dim), output_dim),
        "linear_b": u(ks[5], (ll_output_dim,), output_dim),
    }


def pad_params(params, input_dim, hidden_dim, output_dim, ll_output_dim):
    """Zero-pad feature/class dims to multiples of 128, pre-cast MXU operands
    to bf16 once, pre-transpose the final Linear weight once."""
    f0p = _round_up(input_dim, 128)
    hp = _round_up(hidden_dim, 128)
    fop = _round_up(output_dim, 128)
    cp = _round_up(ll_output_dim, 128)

    def pad2(a, r, c):
        return jnp.pad(a, ((0, r - a.shape[0]), (0, c - a.shape[1])))

    return {
        "f0p": f0p,
        "ll_output_dim": ll_output_dim,
        "conv1": {
            "weight": jnp.pad(
                params["conv1"]["weight"],
                ((0, 0), (0, f0p - input_dim), (0, hp - hidden_dim)),
            ).astype(jnp.bfloat16),
            "root": pad2(params["conv1"]["root"], f0p, hp).astype(jnp.bfloat16),
            "bias": jnp.pad(params["conv1"]["bias"], (0, hp - hidden_dim)
                            ).reshape(1, -1).astype(jnp.float32),
        },
        "conv2": {
            "weight": jnp.pad(
                params["conv2"]["weight"],
                ((0, 0), (0, hp - hidden_dim), (0, fop - output_dim)),
            ).astype(jnp.bfloat16),
            "root": pad2(params["conv2"]["root"], hp, fop).astype(jnp.bfloat16),
            "bias": jnp.pad(params["conv2"]["bias"], (0, fop - output_dim)
                            ).reshape(1, -1).astype(jnp.float32),
        },
        "linear_w_t": pad2(params["linear_w"].T, fop, cp).astype(jnp.bfloat16),
        "linear_b": jnp.pad(params["linear_b"], (0, cp - ll_output_dim)
                            ).reshape(1, -1).astype(jnp.float32),
    }


# ---------------------------------------------------------------------------
# Forward
# ---------------------------------------------------------------------------
def mpnet_forward(pp, metapath, x, edge_index, edge_type):
    n, f_in = x.shape
    n_pad = _round_up(max(n, 1), 256)          # tm>=256 keeps v6e/v7x MXU full
    tm = _pick_tile(n_pad, (512, 256))
    tk = _pick_tile(n_pad, (512, 256))

    h = jnp.pad(x.astype(jnp.float32),
                ((0, n_pad - n), (0, pp["f0p"] - f_in))).astype(jnp.bfloat16)

    rel_cache = {}
    for layer_index, rel in enumerate(metapath):
        rel = int(rel)
        conv = pp["conv1"] if layer_index == 0 else pp["conv2"]
        if rel not in rel_cache:
            rel_cache[rel] = build_relation_blocks(
                edge_index, edge_type, rel, n_pad, tm, tk
            )
        adj, deg, kidx, kcnt, kmax = rel_cache[rel]
        xw16 = precompute_xw(h, conv["weight"][rel], tm)
        h = rgcn_aggregate_relu(adj, xw16, h, conv["root"], conv["bias"], deg,
                                kidx, kcnt, kmax, tm, tk)

    y = linear_log_softmax(h, pp["linear_w_t"], pp["linear_b"],
                           pp["ll_output_dim"], tm)
    return y[:n, : pp["ll_output_dim"]]


def mpnet_forward_ref(params, metapath, x, edge_index, edge_type, quantize=False):
    """Pure-jnp reference. quantize=True mirrors the kernel's bf16 operands
    (bf16 A counts, bf16 weights, bf16 XW, bf16 h carry); f32 deg division."""
    hi = jax.lax.Precision.HIGHEST
    n = x.shape[0]

    def q(a):
        return a.astype(jnp.bfloat16).astype(jnp.float32) if quantize else a

    h = q(x.astype(jnp.float32))
    for layer_index, rel in enumerate(metapath):
        rel = int(rel)
        conv = params["conv1"] if layer_index == 0 else params["conv2"]
        src, tgt = edge_index[0], edge_index[1]
        mask = (edge_type == rel).astype(jnp.float32)
        counts = jnp.zeros((n, n), jnp.float32).at[src, tgt].add(mask)
        deg = counts.sum(axis=1, keepdims=True)
        a = q(counts)
        xw = q(jnp.dot(h, q(conv["weight"][rel]), precision=hi))
        rootb = jnp.dot(h, q(conv["root"]), precision=hi) + conv["bias"]
        agg = jnp.dot(a, xw, precision=hi) / jnp.maximum(deg, 1.0)
        h = q(jnp.maximum(agg + rootb, 0.0))
    y = jnp.dot(h, q(params["linear_w"]).T, precision=hi) + params["linear_b"]
    return jax.nn.log_softmax(y, axis=1)


# ---------------------------------------------------------------------------
if __name__ == "__main__":
    key = jax.random.PRNGKey(0)
    k_x, k_src, k_tgt, k_et, k_p = jax.random.split(key, 5)

    # Small, forward-consistent sizes.
    num_nodes, input_dim, hidden_dim, output_dim = 8, 16, 32, 32
    ll_output_dim, num_rel, num_edges = 8, 3, 20
    metapath = [0, 1]  # layer 0 uses conv1 (rel 0), layer 1 uses conv2 (rel 1)

    x = jax.random.normal(k_x, (num_nodes, input_dim), jnp.float32)
    edge_index = jnp.stack(
        [
            jax.random.randint(k_src, (num_edges,), 0, num_nodes),
            jax.random.randint(k_tgt, (num_edges,), 0, num_nodes),
        ]
    )
    edge_type = jax.random.randint(k_et, (num_edges,), 0, num_rel)

    params = init_params(k_p, input_dim, hidden_dim, num_rel, output_dim, ll_output_dim)
    pp = pad_params(params, input_dim, hidden_dim, output_dim, ll_output_dim)

    out = mpnet_forward(pp, metapath, x, edge_index, edge_type)
    out = jax.block_until_ready(out)
    assert out.shape == (num_nodes, ll_output_dim)

    # Tight check vs a reference that mirrors the kernel's bf16 MXU operands.
    ref_q = mpnet_forward_ref(params, metapath, x, edge_index, edge_type, quantize=True)
    assert jnp.allclose(out, ref_q, atol=5e-3, rtol=5e-3), "mismatch vs bf16-matched ref"

    # Looser check vs the exact f32 module semantics (bf16 operand noise only).
    ref_f = mpnet_forward_ref(params, metapath, x, edge_index, edge_type, quantize=False)
    assert jnp.allclose(out, ref_f, atol=5e-2, rtol=5e-2), "mismatch vs f32 reference"

    print("KERNEL_OK")
</pallas_src>

<mosaic_0001>
module attributes {stable_mosaic.version = 11 : i64} {
  func.func @_xw_kernel(%arg0: i32, %arg1: memref<256x128xbf16, #tpu.memory_space<vmem>>, %arg2: memref<128x128xbf16, #tpu.memory_space<vmem>>, %arg3: memref<256x128xbf16, #tpu.memory_space<vmem>>) attributes {dimension_semantics = [#tpu.dimension_semantics<parallel>], iteration_bounds = array<i64: 1>, scalar_prefetch = 0 : i64, scratch_operands = 0 : i64, tpu.core_type = #tpu.core_type<tc>, window_params = [{transform_indices = @transform_0, window_bounds = array<i64: 256, 128>}, {pipeline_mode = #tpu.pipeline_mode<synchronous>, transform_indices = @transform_1, window_bounds = array<i64: 128, 128>}, {transform_indices = @transform_2, window_bounds = array<i64: 256, 128>}]} {
    %c0 = arith.constant 0 : index
    %c0_0 = arith.constant 0 : index
    %0 = vector.load %arg1[%c0, %c0_0] : memref<256x128xbf16, #tpu.memory_space<vmem>>, vector<256x128xbf16>
    %c0_1 = arith.constant 0 : index
    %c0_2 = arith.constant 0 : index
    %1 = vector.load %arg2[%c0_1, %c0_2] : memref<128x128xbf16, #tpu.memory_space<vmem>>, vector<128x128xbf16>
    %cst = arith.constant dense<0.000000e+00> : vector<256x128xf32>
    %2 = tpu.matmul %0, %1, %cst {dimension_numbers = #tpu.dot_dimension_numbers<[1], [0], [0], [1], [0, 0, 1, 1], [], []>} : vector<256x128xbf16>, vector<128x128xbf16>, vector<256x128xf32> -> vector<256x128xf32>
    %3 = arith.truncf %2 : vector<256x128xf32> to vector<256x128xbf16>
    %c0_3 = arith.constant 0 : index
    %c0_4 = arith.constant 0 : index
    %4 = vector.load %arg3[%c0_3, %c0_4] : memref<256x128xbf16, #tpu.memory_space<vmem>>, vector<256x128xbf16>
    tpu.vector_store %arg3[%c0_3, %c0_4], %3 {strides = array<i32>} : memref<256x128xbf16, #tpu.memory_space<vmem>>, vector<256x128xbf16>,
    return
  }
  func.func @transform_0(%arg0: i32) -> (i32, i32) {
    %c0_i32 = arith.constant 0 : i32
    %c0_i32_0 = arith.constant 0 : i32
    return %arg0, %c0_i32 : i32, i32
  }
  func.func @transform_1(%arg0: i32) -> (i32, i32) {
    %c0_i32 = arith.constant 0 : i32
    %c0_i32_0 = arith.constant 0 : i32
    %c0_i32_1 = arith.constant 0 : i32
    return %c0_i32, %c0_i32_0 : i32, i32
  }
  func.func @transform_2(%arg0: i32) -> (i32, i32) {
    %c0_i32 = arith.constant 0 : i32
    %c0_i32_0 = arith.constant 0 : i32
    return %arg0, %c0_i32 : i32, i32
  }
}

</mosaic_0001>

<bundles_post_ra>
// kernel: tpu_custom_call.1
= control target key start
LH: loop header
LB: loop body
LE: loop exit
PB: predicated region body
PF: predicated region fallthrough
CT: control target
= control target key end

     0   :  { %7 = vsyncpa [#allocation3], 0  ;;  %s976_s0 = inlined_call_operand.hbm [shape: bf16[256,128], index: 0, kind: input, shape index: {}]   ;;  %s977_s1 = inlined_call_operand.hbm [shape: bf16[128,128], index: 1, kind: input, shape index: {}]   ;;  %s978_s2 = inlined_call_operand.hbm [shape: bf16[256,128], index: 2, kind: output, shape index: {}]  }
   0x1   :  { %8 = vsyncpa [#allocation6], 0 }
   0x2   :  { %9 = vsyncpa [#allocation4], 0  ;;  %s938_s9 = smov [#allocation2]  }
   0x3   :  { %s15_s10 = sshll.u32 %s938_s9, 4  ;;  %s16_s10 = int_to_ptr.vmem [resolvable:$true] %s15_s10 }
   0x4   :  { %s880_s11 = scalar_lea.vmem %s16_s10, 2048  ;;  %p885_p1 = scmp.lt.s32.totalorder %s16_s10, %s16_s10 }
   0x5   :  { %p881_p0 = scmp.ne.s32.totalorder %s16_s10, %s880_s11  ;;  %p886_p2 = scmp.lt.s32.totalorder %s880_s11, %s880_s11 }
   0x7   :  { %p887_p3 = por %p886_p2, %p885_p1 }
   0x9   :  { %p888_p4 = pnand %p887_p3, %p881_p0 }
   0xb   :  { %891 = shalt.err (!%p888_p4)
}
   0xc   :  { %s939_s12 = smov 64   ;;  %s940_s13 = smov 4  }
   0xd   :  { %21 = dma.hbm_to_vmem [thread:$0]  %s976_s0, 2048, %s16_s10, [#allocation3], %s939_s12, %s939_s12, %s940_s13  }
   0xe   :  { %s941_s16 = smov [#allocation5]  }
   0xf   :  { %s27_s17 = sshll.u32 %s941_s16, 4  ;;  %s28_s17 = int_to_ptr.vmem [resolvable:$true] %s27_s17 }
  0x10   :  { %s900_s18 = scalar_lea.vmem %s28_s17, 1024  ;;  %p905_p6 = scmp.lt.s32.totalorder %s28_s17, %s28_s17 }
  0x11   :  { %p901_p5 = scmp.ne.s32.totalorder %s28_s17, %s900_s18  ;;  %p906_p7 = scmp.lt.s32.totalorder %s900_s18, %s900_s18 }
  0x13   :  { %p907_p8 = por %p906_p7, %p905_p6 }
  0x15   :  { %p908_p9 = pnand %p907_p8, %p901_p5 }
  0x17   :  { %911 = shalt.err (!%p908_p9)
}
  0x18   :  { %33 = dma.hbm_to_vmem [thread:$0]  %s977_s1, 1024, %s28_s17, [#allocation6], %s939_s12, %s939_s12, %s940_s13  }
  0x19   :  { %932 = dma.done.wait [#allocation3], 2048  }
  0x1a   :  { %933 = vsyncadd [#allocation3], 4294965248 }
  0x1b   :  { %934 = dma.done.wait [#allocation6], 1024  }
  0x1c   :  { %935 = vsyncadd [#allocation6], 4294966272  ;;  %v848_v0 = vld [vmem:[#allocation5 + $0x38] sm:$0xff]   ;;  %v849_v1 = vld [vmem:[#allocation5 + $0x30] sm:$0xff]   ;;  %s942_s0 = smov [#allocation7]  }
  0x1d   :  { %779 = vmatprep.subr.bf16.mxu0 %v848_v0  ;;  %827 = vmatprep.subr.bf16.mxu1 %v848_v0  ;;  %v850_v2 = vld [vmem:[#allocation5 + $0x28] sm:$0xff]   ;;  %v851_v3 = vld [vmem:[#allocation5 + $0x20] sm:$0xff]   ;;  %v852_v6 = vld [vmem:[#allocation5 + $0x18] sm:$0xff]   ;;  %s559_s1 = sshll.u32 %s942_s0, 4  ;;  %s560_s1 = int_to_ptr.vmem [resolvable:$true] %s559_s1 }
  0x1e   :  { %780 = vmatpush3.bf16.msra.mxu0 %v848_v0  ;;  %835 = vmatpush3.bf16.msra.mxu1 %v848_v0  ;;  %v856_v4 = vld [vmem:[#allocation2] sm:$0xff]   ;;  %v853_v7 = vld [vmem:[#allocation5 + $0x10] sm:$0xff]   ;;  %v854_v8 = vld [vmem:[#allocation5 + $0x8] sm:$0xff]   ;;  %s912_s21 = scalar_lea.vmem %s560_s1, 2048  ;;  %p917_p11 = scmp.lt.s32.totalorder %s560_s1, %s560_s1 }
  0x1f   :  { %781 = vmatprep.subr.bf16.mxu0 %v849_v1  ;;  %828 = vmatprep.subr.bf16.mxu1 %v849_v1  ;;  %v857_v5 = vld [vmem:[#allocation2 + $0x40] sm:$0xff]   ;;  %v858_v10 = vld [vmem:[#allocation2 + $0x8] sm:$0xff]   ;;  %v860_v12 = vld [vmem:[#allocation2 + $0x10] sm:$0xff]   ;;  %p913_p10 = scmp.ne.s32.totalorder %s560_s1, %s912_s21  ;;  %p918_p12 = scmp.lt.s32.totalorder %s912_s21, %s912_s21 }
  0x20   :  { %795 = vmatprep.mubr.bf16.mxu0 %v856_v4  ;;  %811 = vmatprep.mubr.bf16.mxu1 %v857_v5  ;;  %v855_v9 = vld [vmem:[#allocation5] sm:$0xff]   ;;  %v859_v11 = vld [vmem:[#allocation2 + $0x48] sm:$0xff]   ;;  %v861_v13 = vld [vmem:[#allocation2 + $0x50] sm:$0xff]  }
  0x21   :  { %v862_v14 = vld [vmem:[#allocation2 + $0x18] sm:$0xff]   ;;  %v864_v16 = vld [vmem:[#allocation2 + $0x20] sm:$0xff]   ;;  %v866_v18 = vld [vmem:[#allocation2 + $0x28] sm:$0xff]   ;;  %p919_p13 = por %p918_p12, %p917_p11 }
  0x22   :  { %782 = vmatpush3.bf16.msra.mxu0 %v849_v1  ;;  %836 = vmatpush3.bf16.msra.mxu1 %v849_v1  ;;  %v863_v15 = vld [vmem:[#allocation2 + $0x58] sm:$0xff]   ;;  %v865_v17 = vld [vmem:[#allocation2 + $0x60] sm:$0xff]   ;;  %v867_v19 = vld [vmem:[#allocation2 + $0x68] sm:$0xff]  }
  0x23   :  { %783 = vmatprep.subr.bf16.mxu0 %v850_v2  ;;  %829 = vmatprep.subr.bf16.mxu1 %v850_v2  ;;  %v868_v20 = vld [vmem:[#allocation2 + $0x30] sm:$0xff]   ;;  %v870_v22 = vld [vmem:[#allocation2 + $0x38] sm:$0xff]   ;;  %p920_p0 = pnand %p919_p13, %p913_p10 }
  0x24   :  { %v869_v21 = vld [vmem:[#allocation2 + $0x70] sm:$0xff]   ;;  %v871_v23 = vld [vmem:[#allocation2 + $0x78] sm:$0xff]  }
  0x26   :  { %784 = vmatpush3.bf16.msra.mxu0 %v850_v2  ;;  %837 = vmatpush3.bf16.msra.mxu1 %v850_v2 }
  0x27   :  { %785 = vmatprep.subr.bf16.mxu0 %v851_v3  ;;  %830 = vmatprep.subr.bf16.mxu1 %v851_v3 }
  0x2a   :  { %786 = vmatpush3.bf16.msra.mxu0 %v851_v3  ;;  %838 = vmatpush3.bf16.msra.mxu1 %v851_v3 }
  0x2b   :  { %787 = vmatprep.subr.bf16.mxu0 %v852_v6  ;;  %831 = vmatprep.subr.bf16.mxu1 %v852_v6 }
  0x2e   :  { %788 = vmatpush3.bf16.msra.mxu0 %v852_v6  ;;  %839 = vmatpush3.bf16.msra.mxu1 %v852_v6 }
  0x2f   :  { %789 = vmatprep.subr.bf16.mxu0 %v853_v7  ;;  %832 = vmatprep.subr.bf16.mxu1 %v853_v7 }
  0x32   :  { %790 = vmatpush3.bf16.msra.mxu0 %v853_v7  ;;  %840 = vmatpush3.bf16.msra.mxu1 %v853_v7 }
  0x33   :  { %791 = vmatprep.subr.bf16.mxu0 %v854_v8  ;;  %833 = vmatprep.subr.bf16.mxu1 %v854_v8 }
  0x36   :  { %792 = vmatpush3.bf16.msra.mxu0 %v854_v8  ;;  %841 = vmatpush3.bf16.msra.mxu1 %v854_v8 }
  0x37   :  { %793 = vmatprep.subr.bf16.mxu0 %v855_v9  ;;  %834 = vmatprep.subr.bf16.mxu1 %v855_v9 }
  0x3a   :  { %794 = vmatpush3.bf16.msra.mxu0 %v855_v9  ;;  %842 = vmatpush3.bf16.msra.mxu1 %v855_v9 }
  0x3d   :  { %796 = vmatmul.mubr.bf16.vlgmr.msra.gmra.mxu0 %v858_v10  ;;  %812 = vmatmul.mubr.bf16.vlgmr.msra.gmra.mxu1 %v859_v11 }
  0x3e   :  { %799 = vmatprep.mubr.bf16.mxu0 %v860_v12  ;;  %815 = vmatprep.mubr.bf16.mxu1 %v861_v13 }
  0x45   :  { %800 = vmatmul.mubr.bf16.gmra.mxu0 %v862_v14  ;;  %816 = vmatmul.mubr.bf16.gmra.mxu1 %v863_v15 }
  0x46   :  { %803 = vmatprep.mubr.bf16.mxu0 %v864_v16  ;;  %819 = vmatprep.mubr.bf16.mxu1 %v865_v17 }
  0x4d   :  { %804 = vmatmul.mubr.bf16.gmra.mxu0 %v866_v18  ;;  %820 = vmatmul.mubr.bf16.gmra.mxu1 %v867_v19 }
  0x4e   :  { %807 = vmatprep.mubr.bf16.mxu0 %v868_v20  ;;  %823 = vmatprep.mubr.bf16.mxu1 %v869_v21 }
  0x55   :  { %808 = vmatmul.mubr.bf16.gmra.mxu0 %v870_v22  ;;  %824 = vmatmul.mubr.bf16.gmra.mxu1 %v871_v23 }
  0xfd   :  { %v797_v24 = vpop.f32.mrf.mxu0  ;;  %v813_v25 = vpop.f32.mrf.mxu1 }
  0xff   :  { %v267_v26 = vpop.f32.mrf.mxu0  ;;  %v331_v27 = vpop.f32.mrf.mxu1 }
 0x101   :  { %v798_v28 = vpop.f32.mrf.mxu0  ;;  %v814_v29 = vpop.f32.mrf.mxu1 }
 0x102   :  { %v668_v30 = vpack.c.bf16 %v798_v28, %v797_v24  ;;  %v708_v31 = vpack.c.bf16 %v814_v29, %v813_v25 }
 0x103   :  { %v270_v32 = vpop.f32.mrf.mxu0  ;;  %v334_v33 = vpop.f32.mrf.mxu1 }
 0x104   :  { %740 = vst [vmem:[#allocation7 + $0x8] sm:$0xff] %v668_v30   ;;  %748 = vst [vmem:[#allocation7 + $0x48] sm:$0xff] %v708_v31   ;;  %v663_v34 = vpack.c.bf16 %v270_v32, %v267_v26  ;;  %v703_v35 = vpack.c.bf16 %v334_v33, %v331_v27 }
 0x105   :  { %v801_v36 = vpop.f32.mrf.mxu0  ;;  %v817_v37 = vpop.f32.mrf.mxu1 }
 0x106   :  { %664 = vst [vmem:[#allocation7] sm:$0xff] %v663_v34   ;;  %747 = vst [vmem:[#allocation7 + $0x40] sm:$0xff] %v703_v35  }
 0x107   :  { %v283_v38 = vpop.f32.mrf.mxu0  ;;  %v347_v39 = vpop.f32.mrf.mxu1 }
 0x109   :  { %v802_v40 = vpop.f32.mrf.mxu0  ;;  %v818_v41 = vpop.f32.mrf.mxu1 }
 0x10a   :  { %v678_v42 = vpack.c.bf16 %v802_v40, %v801_v36  ;;  %v718_v43 = vpack.c.bf16 %v818_v41, %v817_v37 }
 0x10b   :  { %v286_v44 = vpop.f32.mrf.mxu0  ;;  %v350_v45 = vpop.f32.mrf.mxu1 }
 0x10c   :  { %742 = vst [vmem:[#allocation7 + $0x18] sm:$0xff] %v678_v42   ;;  %750 = vst [vmem:[#allocation7 + $0x58] sm:$0xff] %v718_v43   ;;  %v673_v46 = vpack.c.bf16 %v286_v44, %v283_v38  ;;  %v713_v47 = vpack.c.bf16 %v350_v45, %v347_v39 }
 0x10d   :  { %v805_v48 = vpop.f32.mrf.mxu0  ;;  %v821_v49 = vpop.f32.mrf.mxu1 }
 0x10e   :  { %741 = vst [vmem:[#allocation7 + $0x10] sm:$0xff] %v673_v46   ;;  %749 = vst [vmem:[#allocation7 + $0x50] sm:$0xff] %v713_v47  }
 0x10f   :  { %v299_v50 = vpop.f32.mrf.mxu0  ;;  %v363_v51 = vpop.f32.mrf.mxu1 }
 0x111   :  { %v806_v52 = vpop.f32.mrf.mxu0  ;;  %v822_v53 = vpop.f32.mrf.mxu1 }
 0x112   :  { %v688_v54 = vpack.c.bf16 %v806_v52, %v805_v48  ;;  %v728_v55 = vpack.c.bf16 %v822_v53, %v821_v49 }
 0x113   :  { %v302_v56 = vpop.f32.mrf.mxu0  ;;  %v366_v57 = vpop.f32.mrf.mxu1 }
 0x114   :  { %744 = vst [vmem:[#allocation7 + $0x28] sm:$0xff] %v688_v54   ;;  %752 = vst [vmem:[#allocation7 + $0x68] sm:$0xff] %v728_v55   ;;  %v683_v58 = vpack.c.bf16 %v302_v56, %v299_v50  ;;  %v723_v59 = vpack.c.bf16 %v366_v57, %v363_v51 }
 0x115   :  { %v809_v60 = vpop.f32.mrf.mxu0  ;;  %v825_v61 = vpop.f32.mrf.mxu1 }
 0x116   :  { %743 = vst [vmem:[#allocation7 + $0x20] sm:$0xff] %v683_v58   ;;  %751 = vst [vmem:[#allocation7 + $0x60] sm:$0xff] %v723_v59  }
 0x117   :  { %v315_v62 = vpop.f32.mrf.mxu0  ;;  %v379_v63 = vpop.f32.mrf.mxu1 }
 0x119   :  { %v810_v0 = vpop.f32.mrf.mxu0  ;;  %v826_v1 = vpop.f32.mrf.mxu1 }
 0x11a   :  { %v698_v2 = vpack.c.bf16 %v810_v0, %v809_v60  ;;  %v738_v3 = vpack.c.bf16 %v826_v1, %v825_v61 }
 0x11b   :  { %v318_v4 = vpop.f32.mrf.mxu0  ;;  %v382_v5 = vpop.f32.mrf.mxu1 }
 0x11c   :  { %746 = vst [vmem:[#allocation7 + $0x38] sm:$0xff] %v698_v2   ;;  %754 = vst [vmem:[#allocation7 + $0x78] sm:$0xff] %v738_v3   ;;  %v693_v6 = vpack.c.bf16 %v318_v4, %v315_v62  ;;  %v733_v7 = vpack.c.bf16 %v382_v5, %v379_v63 }
 0x11e   :  { %745 = vst [vmem:[#allocation7 + $0x30] sm:$0xff] %v693_v6   ;;  %753 = vst [vmem:[#allocation7 + $0x70] sm:$0xff] %v733_v7  }
 0x11f   :  { %923 = shalt.err (!%p920_p0)
}
 0x120   :  { %565 = dma.vmem_to_hbm [thread:$0]  %s560_s1, 2048, %s978_s2, [#allocation4], %s939_s12, %s939_s12, %s940_s13  }
 0x121   :  { %936 = dma.done.wait [#allocation4], 2048  }
 0x122   :  { %937 = vsyncadd [#allocation4], 4294965248 }
 0x123   :  { %569 = vsyncpa [#allocation3], 1 }
 0x124   :  { %570 = vsyncpa [#allocation6], 1 }
 0x125   :  { %571 = vsyncpa [#allocation4], 1 }

</bundles_post_ra>
